<compile_context>
chip_gen: v7x
topology: tpu7x:2x2x1
jax: 0.10.0
libtpu: 0.0.40
codegen_flags: <defaults>
</compile_context>

<pallas_src>
import functools

import jax
import jax.numpy as jnp
from jax.experimental import pallas as pl
from jax.experimental.pallas import tpu as pltpu


def _conv_bn_relu_kernel(x_ref, b_ref, bias_ref, o_ref, *, compute_dtype):
    # x_ref:    (N, Hp, W*Cin)      f32   H-padded NHWC activations (lane = w*Cin + cin)
    # b_ref:    (3, W*Cin, W*Cout)  bf16  BN-scaled banded block-Toeplitz weights (per ky)
    # bias_ref: (1, W*Cout)         f32   folded BN bias tiled across W
    # o_ref:    (N, H, W*Cout)      bf16  lane-dense output
    n_batch, h_out, n_lane = o_ref.shape
    k_rows = b_ref.shape[0]
    bias = bias_ref[...]
    for n in range(n_batch):                      # static unroll (small N)
        acc = jnp.zeros((h_out, n_lane), jnp.float32)
        for ky in range(k_rows):                  # static unroll over the 3 kernel rows
            a = x_ref[n, ky:ky + h_out, :].astype(compute_dtype)   # (H, W*Cin)
            acc = acc + jnp.dot(a, b_ref[ky], preferred_element_type=jnp.float32)
        o_ref[n] = jnp.maximum(acc + bias, 0.0).astype(o_ref.dtype)


def conv_bn_relu(x_nchw, weight, gamma, beta, running_mean, running_var, *,
                 eps=1e-5, stride=1, padding=1,
                 compute_dtype=jnp.bfloat16, out_dtype=jnp.bfloat16):
    """Forward of _ConvBNReLU. x_nchw: (N, Cin, H, W); weight: (Cout, Cin, 3, 3)."""
    assert stride == 1 and padding == 1, "kernel specialized to stride=1, padding=1"
    N, Cin, H, W = x_nchw.shape
    Cout, Cin_w, K, K2 = weight.shape
    assert Cin_w == Cin and K == K2 == 3

    Hp = H + 2 * padding

    # --- network-boundary layout + one-time constant folding (plain JAX, jit-folded) ---
    # NCHW -> NHWC (real relayout; only at the boundary), pad rows only.
    x_nhwc = jnp.transpose(x_nchw, (0, 2, 3, 1)).astype(jnp.float32)
    x_hpad = jnp.pad(x_nhwc, ((0, 0), (padding, padding), (0, 0), (0, 0)))
    x_in = x_hpad.reshape(N, Hp, W * Cin)

    # Fold eval-mode BatchNorm into conv weights (scale) + per-channel bias.
    scale = (gamma / jnp.sqrt(running_var + eps)).astype(jnp.float32)        # (Cout,)
    bias = (beta - running_mean * scale).astype(jnp.float32)                 # (Cout,)
    w_hwio = jnp.transpose(weight, (2, 3, 1, 0)).astype(jnp.float32) * scale  # (3,3,Cin,Cout)

    # Banded block-Toeplitz weights along W (one band per kernel row ky); boundary
    # zeros live here, not in the activations:
    #   B[ky, col*Cin+cin, w*Cout+c] = w_hwio[ky, col - w + pad, cin, c] if in band else 0
    col = jnp.arange(W)[:, None]                 # input column
    wo = jnp.arange(W)[None, :]                  # output column
    kx = col - wo + padding                      # (W, W)
    valid = (kx >= 0) & (kx < K)
    kx_c = jnp.clip(kx, 0, K - 1)
    B = w_hwio[:, kx_c, :, :]                                   # (3, W, W, Cin, Cout)
    B = jnp.where(valid[None, :, :, None, None], B, 0.0)
    B = jnp.transpose(B, (0, 1, 3, 2, 4)).reshape(K, W * Cin, W * Cout)
    B = B.astype(compute_dtype)

    bias_dense = jnp.tile(bias, W).reshape(1, W * Cout).astype(jnp.float32)

    kernel = functools.partial(_conv_bn_relu_kernel, compute_dtype=compute_dtype)

    out = pl.pallas_call(
        kernel,
        out_shape=jax.ShapeDtypeStruct((N, H, W * Cout), out_dtype),
        grid_spec=pltpu.PrefetchScalarGridSpec(
            num_scalar_prefetch=0,
            grid=(1,),  # whole problem as one resident block (<<1 MiB of VMEM)
            in_specs=[
                pl.BlockSpec((N, Hp, W * Cin), lambda i: (0, 0, 0)),
                pl.BlockSpec((K, W * Cin, W * Cout), lambda i: (0, 0, 0)),
                pl.BlockSpec((1, W * Cout), lambda i: (0, 0)),
            ],
            out_specs=pl.BlockSpec((N, H, W * Cout), lambda i: (0, 0, 0)),
        ),
        compiler_params=pltpu.CompilerParams(
            dimension_semantics=("arbitrary",)),
    )(x_in, B, bias_dense)

    # Back to NCHW only at the network boundary (real relayout copy).
    return jnp.transpose(out.reshape(N, H, W, Cout), (0, 3, 1, 2))


def _reference(x_nchw, weight, gamma, beta, running_mean, running_var, eps=1e-5):
    y = jax.lax.conv_general_dilated(
        x_nchw.astype(jnp.float32), weight.astype(jnp.float32),
        window_strides=(1, 1), padding=((1, 1), (1, 1)),
        dimension_numbers=("NCHW", "OIHW", "NCHW"))
    scale = gamma / jnp.sqrt(running_var + eps)
    bias = beta - running_mean * scale
    y = y * scale[None, :, None, None] + bias[None, :, None, None]
    return jnp.maximum(y, 0.0)


if __name__ == "__main__":
    # Module config: in_channels=4, out_channels=8, kernel_size=3, stride=1, padding=1
    N, Cin, Cout, H, W, K = 2, 4, 8, 16, 16, 3

    key = jax.random.PRNGKey(0)
    k1, k2, k3, k4, k5, k6 = jax.random.split(key, 6)

    x = jax.random.normal(k1, (N, Cin, H, W), dtype=jnp.float32)
    weight = jax.random.normal(k2, (Cout, Cin, K, K), dtype=jnp.float32) * 0.1
    # BatchNorm2d params / running stats (eval-mode semantics), deterministic non-trivial init.
    gamma = 1.0 + 0.1 * jax.random.normal(k3, (Cout,), dtype=jnp.float32)
    beta = 0.1 * jax.random.normal(k4, (Cout,), dtype=jnp.float32)
    running_mean = 0.1 * jax.random.normal(k5, (Cout,), dtype=jnp.float32)
    running_var = 1.0 + 0.1 * jax.random.uniform(k6, (Cout,), dtype=jnp.float32)

    fwd = jax.jit(conv_bn_relu)  # BN fold + Toeplitz B build constant-folded once
    out = fwd(x, weight, gamma, beta, running_mean, running_var)
    out = jax.block_until_ready(out)

    ref = _reference(x, weight, gamma, beta, running_mean, running_var)
    assert out.shape == (N, Cout, H, W)
    # bf16 MXU inputs + bf16 output (f32 accumulate) -> relaxed tolerance.
    out_f32 = out.astype(jnp.float32)
    assert jnp.allclose(out_f32, ref, atol=1e-1, rtol=1e-1), \
        float(jnp.max(jnp.abs(out_f32 - ref)))
    print("KERNEL_OK")
</pallas_src>

<mosaic_0001>
module attributes {stable_mosaic.version = 11 : i64} {
  func.func @_conv_bn_relu_kernel(%arg0: i32, %arg1: memref<2x18x64xf32, #tpu.memory_space<vmem>>, %arg2: memref<3x64x128xbf16, #tpu.memory_space<vmem>>, %arg3: memref<1x128xf32, #tpu.memory_space<vmem>>, %arg4: memref<2x16x128xbf16, #tpu.memory_space<vmem>>) attributes {dimension_semantics = [#tpu.dimension_semantics<arbitrary>], iteration_bounds = array<i64: 1>, scalar_prefetch = 0 : i64, scratch_operands = 0 : i64, tpu.core_type = #tpu.core_type<tc>, window_params = [{pipeline_mode = #tpu.pipeline_mode<synchronous>, transform_indices = @transform_0, window_bounds = array<i64: 2, 18, 64>}, {pipeline_mode = #tpu.pipeline_mode<synchronous>, transform_indices = @transform_1, window_bounds = array<i64: 3, 64, 128>}, {pipeline_mode = #tpu.pipeline_mode<synchronous>, transform_indices = @transform_2, window_bounds = array<i64: 1, 128>}, {pipeline_mode = #tpu.pipeline_mode<synchronous>, transform_indices = @transform_3, window_bounds = array<i64: 2, 16, 128>}]} {
    %c0 = arith.constant 0 : index
    %c0_0 = arith.constant 0 : index
    %0 = vector.load %arg3[%c0, %c0_0] : memref<1x128xf32, #tpu.memory_space<vmem>>, vector<1x128xf32>
    %cst = arith.constant 0.000000e+00 : f32
    %1 = vector.broadcast %cst : f32 to vector<16x128xf32>
    %c0_1 = arith.constant 0 : index
    %c0_2 = arith.constant 0 : index
    %c0_3 = arith.constant 0 : index
    %2 = vector.load %arg1[%c0_1, %c0_2, %c0_3] : memref<2x18x64xf32, #tpu.memory_space<vmem>>, vector<1x16x64xf32>
    %3 = vector.shape_cast %2 : vector<1x16x64xf32> to vector<16x64xf32>
    %4 = arith.truncf %3 : vector<16x64xf32> to vector<16x64xbf16>
    %c0_4 = arith.constant 0 : index
    %c0_5 = arith.constant 0 : index
    %c0_6 = arith.constant 0 : index
    %5 = vector.load %arg2[%c0_4, %c0_5, %c0_6] : memref<3x64x128xbf16, #tpu.memory_space<vmem>>, vector<1x64x128xbf16>
    %6 = vector.shape_cast %5 : vector<1x64x128xbf16> to vector<64x128xbf16>
    %cst_7 = arith.constant dense<0.000000e+00> : vector<16x128xf32>
    %7 = tpu.matmul %4, %6, %cst_7 {dimension_numbers = #tpu.dot_dimension_numbers<[1], [0], [0], [1], [0, 0, 1, 1], [], []>} : vector<16x64xbf16>, vector<64x128xbf16>, vector<16x128xf32> -> vector<16x128xf32>
    %8 = arith.addf %1, %7 : vector<16x128xf32>
    %c0_8 = arith.constant 0 : index
    %c1 = arith.constant 1 : index
    %c0_9 = arith.constant 0 : index
    %9 = vector.load %arg1[%c0_8, %c1, %c0_9] : memref<2x18x64xf32, #tpu.memory_space<vmem>>, vector<1x16x64xf32>
    %10 = vector.shape_cast %9 : vector<1x16x64xf32> to vector<16x64xf32>
    %11 = arith.truncf %10 : vector<16x64xf32> to vector<16x64xbf16>
    %c1_10 = arith.constant 1 : index
    %c0_11 = arith.constant 0 : index
    %c0_12 = arith.constant 0 : index
    %12 = vector.load %arg2[%c1_10, %c0_11, %c0_12] : memref<3x64x128xbf16, #tpu.memory_space<vmem>>, vector<1x64x128xbf16>
    %13 = vector.shape_cast %12 : vector<1x64x128xbf16> to vector<64x128xbf16>
    %cst_13 = arith.constant dense<0.000000e+00> : vector<16x128xf32>
    %14 = tpu.matmul %11, %13, %cst_13 {dimension_numbers = #tpu.dot_dimension_numbers<[1], [0], [0], [1], [0, 0, 1, 1], [], []>} : vector<16x64xbf16>, vector<64x128xbf16>, vector<16x128xf32> -> vector<16x128xf32>
    %15 = arith.addf %8, %14 : vector<16x128xf32>
    %c0_14 = arith.constant 0 : index
    %c2 = arith.constant 2 : index
    %c0_15 = arith.constant 0 : index
    %16 = vector.load %arg1[%c0_14, %c2, %c0_15] : memref<2x18x64xf32, #tpu.memory_space<vmem>>, vector<1x16x64xf32>
    %17 = vector.shape_cast %16 : vector<1x16x64xf32> to vector<16x64xf32>
    %18 = arith.truncf %17 : vector<16x64xf32> to vector<16x64xbf16>
    %c2_16 = arith.constant 2 : index
    %c0_17 = arith.constant 0 : index
    %c0_18 = arith.constant 0 : index
    %19 = vector.load %arg2[%c2_16, %c0_17, %c0_18] : memref<3x64x128xbf16, #tpu.memory_space<vmem>>, vector<1x64x128xbf16>
    %20 = vector.shape_cast %19 : vector<1x64x128xbf16> to vector<64x128xbf16>
    %cst_19 = arith.constant dense<0.000000e+00> : vector<16x128xf32>
    %21 = tpu.matmul %18, %20, %cst_19 {dimension_numbers = #tpu.dot_dimension_numbers<[1], [0], [0], [1], [0, 0, 1, 1], [], []>} : vector<16x64xbf16>, vector<64x128xbf16>, vector<16x128xf32> -> vector<16x128xf32>
    %22 = arith.addf %15, %21 : vector<16x128xf32>
    %23 = vector.broadcast %0 : vector<1x128xf32> to vector<16x128xf32>
    %24 = arith.addf %22, %23 : vector<16x128xf32>
    %cst_20 = arith.constant 0.000000e+00 : f32
    %25 = vector.broadcast %cst_20 : f32 to vector<16x128xf32>
    %26 = arith.maximumf %24, %25 : vector<16x128xf32>
    %27 = arith.truncf %26 : vector<16x128xf32> to vector<16x128xbf16>
    %c0_21 = arith.constant 0 : index
    %c0_22 = arith.constant 0 : index
    %c0_23 = arith.constant 0 : index
    %28 = vector.load %arg4[%c0_21, %c0_22, %c0_23] : memref<2x16x128xbf16, #tpu.memory_space<vmem>>, vector<1x16x128xbf16>
    %29 = vector.shape_cast %28 : vector<1x16x128xbf16> to vector<16x128xbf16>
    %30 = vector.shape_cast %27 : vector<16x128xbf16> to vector<1x16x128xbf16>
    tpu.vector_store %arg4[%c0_21, %c0_22, %c0_23], %30 {strides = array<i32>} : memref<2x16x128xbf16, #tpu.memory_space<vmem>>, vector<1x16x128xbf16>,
    %cst_24 = arith.constant 0.000000e+00 : f32
    %31 = vector.broadcast %cst_24 : f32 to vector<16x128xf32>
    %c1_25 = arith.constant 1 : index
    %c0_26 = arith.constant 0 : index
    %c0_27 = arith.constant 0 : index
    %32 = vector.load %arg1[%c1_25, %c0_26, %c0_27] : memref<2x18x64xf32, #tpu.memory_space<vmem>>, vector<1x16x64xf32>
    %33 = vector.shape_cast %32 : vector<1x16x64xf32> to vector<16x64xf32>
    %34 = arith.truncf %33 : vector<16x64xf32> to vector<16x64xbf16>
    %c0_28 = arith.constant 0 : index
    %c0_29 = arith.constant 0 : index
    %c0_30 = arith.constant 0 : index
    %35 = vector.load %arg2[%c0_28, %c0_29, %c0_30] : memref<3x64x128xbf16, #tpu.memory_space<vmem>>, vector<1x64x128xbf16>
    %36 = vector.shape_cast %35 : vector<1x64x128xbf16> to vector<64x128xbf16>
    %cst_31 = arith.constant dense<0.000000e+00> : vector<16x128xf32>
    %37 = tpu.matmul %34, %36, %cst_31 {dimension_numbers = #tpu.dot_dimension_numbers<[1], [0], [0], [1], [0, 0, 1, 1], [], []>} : vector<16x64xbf16>, vector<64x128xbf16>, vector<16x128xf32> -> vector<16x128xf32>
    %38 = arith.addf %31, %37 : vector<16x128xf32>
    %c1_32 = arith.constant 1 : index
    %c1_33 = arith.constant 1 : index
    %c0_34 = arith.constant 0 : index
    %39 = vector.load %arg1[%c1_32, %c1_33, %c0_34] : memref<2x18x64xf32, #tpu.memory_space<vmem>>, vector<1x16x64xf32>
    %40 = vector.shape_cast %39 : vector<1x16x64xf32> to vector<16x64xf32>
    %41 = arith.truncf %40 : vector<16x64xf32> to vector<16x64xbf16>
    %c1_35 = arith.constant 1 : index
    %c0_36 = arith.constant 0 : index
    %c0_37 = arith.constant 0 : index
    %42 = vector.load %arg2[%c1_35, %c0_36, %c0_37] : memref<3x64x128xbf16, #tpu.memory_space<vmem>>, vector<1x64x128xbf16>
    %43 = vector.shape_cast %42 : vector<1x64x128xbf16> to vector<64x128xbf16>
    %cst_38 = arith.constant dense<0.000000e+00> : vector<16x128xf32>
    %44 = tpu.matmul %41, %43, %cst_38 {dimension_numbers = #tpu.dot_dimension_numbers<[1], [0], [0], [1], [0, 0, 1, 1], [], []>} : vector<16x64xbf16>, vector<64x128xbf16>, vector<16x128xf32> -> vector<16x128xf32>
    %45 = arith.addf %38, %44 : vector<16x128xf32>
    %c1_39 = arith.constant 1 : index
    %c2_40 = arith.constant 2 : index
    %c0_41 = arith.constant 0 : index
    %46 = vector.load %arg1[%c1_39, %c2_40, %c0_41] : memref<2x18x64xf32, #tpu.memory_space<vmem>>, vector<1x16x64xf32>
    %47 = vector.shape_cast %46 : vector<1x16x64xf32> to vector<16x64xf32>
    %48 = arith.truncf %47 : vector<16x64xf32> to vector<16x64xbf16>
    %c2_42 = arith.constant 2 : index
    %c0_43 = arith.constant 0 : index
    %c0_44 = arith.constant 0 : index
    %49 = vector.load %arg2[%c2_42, %c0_43, %c0_44] : memref<3x64x128xbf16, #tpu.memory_space<vmem>>, vector<1x64x128xbf16>
    %50 = vector.shape_cast %49 : vector<1x64x128xbf16> to vector<64x128xbf16>
    %cst_45 = arith.constant dense<0.000000e+00> : vector<16x128xf32>
    %51 = tpu.matmul %48, %50, %cst_45 {dimension_numbers = #tpu.dot_dimension_numbers<[1], [0], [0], [1], [0, 0, 1, 1], [], []>} : vector<16x64xbf16>, vector<64x128xbf16>, vector<16x128xf32> -> vector<16x128xf32>
    %52 = arith.addf %45, %51 : vector<16x128xf32>
    %53 = vector.broadcast %0 : vector<1x128xf32> to vector<16x128xf32>
    %54 = arith.addf %52, %53 : vector<16x128xf32>
    %cst_46 = arith.constant 0.000000e+00 : f32
    %55 = vector.broadcast %cst_46 : f32 to vector<16x128xf32>
    %56 = arith.maximumf %54, %55 : vector<16x128xf32>
    %57 = arith.truncf %56 : vector<16x128xf32> to vector<16x128xbf16>
    %c1_47 = arith.constant 1 : index
    %c0_48 = arith.constant 0 : index
    %c0_49 = arith.constant 0 : index
    %58 = vector.load %arg4[%c1_47, %c0_48, %c0_49] : memref<2x16x128xbf16, #tpu.memory_space<vmem>>, vector<1x16x128xbf16>
    %59 = vector.shape_cast %58 : vector<1x16x128xbf16> to vector<16x128xbf16>
    %60 = vector.shape_cast %57 : vector<16x128xbf16> to vector<1x16x128xbf16>
    tpu.vector_store %arg4[%c1_47, %c0_48, %c0_49], %60 {strides = array<i32>} : memref<2x16x128xbf16, #tpu.memory_space<vmem>>, vector<1x16x128xbf16>,
    return
  }
  func.func @transform_0(%arg0: i32) -> (i32, i32, i32) {
    %c0_i32 = arith.constant 0 : i32
    %c0_i32_0 = arith.constant 0 : i32
    %c0_i32_1 = arith.constant 0 : i32
    %c0_i32_2 = arith.constant 0 : i32
    return %c0_i32, %c0_i32_0, %c0_i32_1 : i32, i32, i32
  }
  func.func @transform_1(%arg0: i32) -> (i32, i32, i32) {
    %c0_i32 = arith.constant 0 : i32
    %c0_i32_0 = arith.constant 0 : i32
    %c0_i32_1 = arith.constant 0 : i32
    %c0_i32_2 = arith.constant 0 : i32
    return %c0_i32, %c0_i32_0, %c0_i32_1 : i32, i32, i32
  }
  func.func @transform_2(%arg0: i32) -> (i32, i32) {
    %c0_i32 = arith.constant 0 : i32
    %c0_i32_0 = arith.constant 0 : i32
    %c0_i32_1 = arith.constant 0 : i32
    return %c0_i32, %c0_i32_0 : i32, i32
  }
  func.func @transform_3(%arg0: i32) -> (i32, i32, i32) {
    %c0_i32 = arith.constant 0 : i32
    %c0_i32_0 = arith.constant 0 : i32
    %c0_i32_1 = arith.constant 0 : i32
    %c0_i32_2 = arith.constant 0 : i32
    return %c0_i32, %c0_i32_0, %c0_i32_1 : i32, i32, i32
  }
}

</mosaic_0001>

<bundles_post_ra>
// kernel: tile.8
= control target key start
LH: loop header
LB: loop body
LE: loop exit
PB: predicated region body
PF: predicated region fallthrough
CT: control target
= control target key end

     0   :  { %s28_s0 = inlined_call_operand.vmem [shape: f32[8], index: 0, kind: input, shape index: {}]   ;;  %s29_s1 = inlined_call_operand.vmem [shape: f32[16,8], index: 1, kind: output, shape index: {}]  }
   0x1   :  { %v4_v0 = vld [vmem:[%s28_s0] ss:$0 sm:$0xff] }
   0x2   :  { %5 = vst [vmem:[%s29_s1] sm:$0xff] %v4_v0  ;;  %8 = vst [vmem:[%s29_s1 + $0x8] sm:$0xff] %v4_v0 }

// kernel: tile.9
= control target key start
LH: loop header
LB: loop body
LE: loop exit
PB: predicated region body
PF: predicated region fallthrough
CT: control target
= control target key end

     0   :  { %s131_s10 = smov 120   ;;  %s132_s11 = smov 104   ;;  %vm3_vm0 = vcmask 64512   ;;  %vm9_vm1 = vcmask 1048512   ;;  %vm15_vm2 = vcmask 982912   ;;  %vm21_vm3 = vcmask 917312   ;;  %s207_s0 = inlined_call_operand.vmem [shape: f32[16,8], index: 0, kind: input, shape index: {}]   ;;  %s208_s1 = inlined_call_operand.vmem [shape: f32[1,128], index: 1, kind: output, shape index: {}]  }
   0x1   :  { %v101_v0 = vld [vmem:[%s207_s0 + $0xf] sm:$0x1]   ;;  %v103_v1 = vld [vmem:[%s207_s0 + $0xd] sm:$0x1]   ;;  %v102_v2 = vld [vmem:[%s207_s0 + $0xe] sm:$0x1]  }
   0x2   :  { %7 = vrot.lane.b32.xlu0 %v101_v0, %s131_s10  ;;  %19 = vrot.lane.b32.xlu1 %v103_v1, %s132_s11  ;;  %v104_v3 = vld [vmem:[%s207_s0 + $0xc] sm:$0x1]   ;;  %s133_s16 = smov 112   ;;  %s134_s17 = smov 96   ;;  %v105_v4 = vld [vmem:[%s207_s0 + $0xb] sm:$0x1]  }
   0x3   :  { %v106_v5 = vld [vmem:[%s207_s0 + $0xa] sm:$0x1]   ;;  %v2_v6 = vld [vmem:[%s207_s0] sm:$0x1]   ;;  %s135_s24 = smov 88   ;;  %s136_s25 = smov 80  }
   0x4   :  { %4 = vst.msk [vmem:[#allocation0] sm:$0x1] %vm3_vm0, %v2_v6   ;;  %v107_v7 = vld [vmem:[%s207_s0 + $0x9] sm:$0x1]   ;;  %v108_v8 = vld [vmem:[%s207_s0 + $0x8] sm:$0x1]  }
   0x5   :  { %s137_s30 = smov 72   ;;  %s138_s2 = smov 64   ;;  %v109_v9 = vld [vmem:[%s207_s0 + $0x7] sm:$0x1]   ;;  %v110_v10 = vld [vmem:[%s207_s0 + $0x6] sm:$0x1]  }
   0x6   :  { %13 = vrot.lane.b32.xlu0 %v102_v2, %s133_s16  ;;  %25 = vrot.lane.b32.xlu1 %v104_v3, %s134_s17  ;;  %s139_s7 = smov 56   ;;  %s140_s8 = smov 48   ;;  %v111_v11 = vld [vmem:[%s207_s0 + $0x5] sm:$0x1]   ;;  %v112_v12 = vld [vmem:[%s207_s0 + $0x4] sm:$0x1]  }
   0x7   :  { %s141_s13 = smov 40   ;;  %s142_s14 = smov 32   ;;  %v113_v13 = vld [vmem:[%s207_s0 + $0x3] sm:$0x1]   ;;  %v114_v14 = vld [vmem:[%s207_s0 + $0x2] sm:$0x1]  }
   0x8   :  { %s143_s19 = smov 24   ;;  %s144_s20 = smov 16   ;;  %v115_v15 = vld [vmem:[%s207_s0 + $0x1] sm:$0x1]   ;;  %vm27_vm4 = vcmask 851712   ;;  %vm33_vm5 = vcmask 786112  }
   0x9   :  { %s145_s0 = smov 8   ;;  %vm39_vm6 = vcmask 720512   ;;  %vm45_vm7 = vcmask 654912   ;;  %vm51_vm8 = vcmask 589312   ;;  %vm57_vm9 = vcmask 523712  }
   0xa   :  { %31 = vrot.lane.b32.xlu0 %v105_v4, %s135_s24  ;;  %37 = vrot.lane.b32.xlu1 %v106_v5, %s136_s25  ;;  %vm63_vm10 = vcmask 458112   ;;  %vm69_vm11 = vcmask 392512   ;;  %vm75_vm12 = vcmask 326912   ;;  %vm81_vm13 = vcmask 261312  }
   0xb   :  { %vm87_vm14 = vcmask 195712   ;;  %vm93_vm15 = vcmask 130112  }
   0xe   :  { %43 = vrot.lane.b32.xlu0 %v107_v7, %s137_s30  ;;  %49 = vrot.lane.b32.xlu1 %v108_v8, %s138_s2 }
  0x12   :  { %55 = vrot.lane.b32.xlu0 %v109_v9, %s139_s7  ;;  %61 = vrot.lane.b32.xlu1 %v110_v10, %s140_s8 }
  0x16   :  { %67 = vrot.lane.b32.xlu0 %v111_v11, %s141_s13  ;;  %73 = vrot.lane.b32.xlu1 %v112_v12, %s142_s14 }
  0x1a   :  { %79 = vrot.lane.b32.xlu0 %v113_v13, %s143_s19  ;;  %85 = vrot.lane.b32.xlu1 %v114_v14, %s144_s20 }
  0x1e   :  { %91 = vrot.lane.b32.xlu0 %v115_v15, %s145_s0 }
  0x74   :  { %v8_v16 = vpop.permute.xlu0 %7   ;;  %v20_v17 = vpop.permute.xlu1 %19  }
  0x75   :  { %10 = vst.msk [vmem:[#allocation0] sm:$0x1] %vm9_vm1, %v8_v16  }
  0x78   :  { %v14_v18 = vpop.permute.xlu0 %13   ;;  %v26_v19 = vpop.permute.xlu1 %25  }
  0x79   :  { %16 = vst.msk [vmem:[#allocation0] sm:$0x1] %vm15_vm2, %v14_v18  }
  0x7a   :  { %22 = vst.msk [vmem:[#allocation0] sm:$0x1] %vm21_vm3, %v20_v17  }
  0x7b   :  { %28 = vst.msk [vmem:[#allocation0] sm:$0x1] %vm27_vm4, %v26_v19  }
  0x7c   :  { %v32_v20 = vpop.permute.xlu0 %31   ;;  %v38_v21 = vpop.permute.xlu1 %37  }
  0x7d   :  { %34 = vst.msk [vmem:[#allocation0] sm:$0x1] %vm33_vm5, %v32_v20  }
  0x7e   :  { %40 = vst.msk [vmem:[#allocation0] sm:$0x1] %vm39_vm6, %v38_v21  }
  0x80   :  { %v44_v22 = vpop.permute.xlu0 %43   ;;  %v50_v23 = vpop.permute.xlu1 %49  }
  0x81   :  { %46 = vst.msk [vmem:[#allocation0] sm:$0x1] %vm45_vm7, %v44_v22  }
  0x82   :  { %52 = vst.msk [vmem:[#allocation0] sm:$0x1] %vm51_vm8, %v50_v23  }
  0x84   :  { %v56_v24 = vpop.permute.xlu0 %55   ;;  %v62_v25 = vpop.permute.xlu1 %61  }
  0x85   :  { %58 = vst.msk [vmem:[#allocation0] sm:$0x1] %vm57_vm9, %v56_v24  }
  0x86   :  { %64 = vst.msk [vmem:[#allocation0] sm:$0x1] %vm63_vm10, %v62_v25  }
  0x88   :  { %v68_v26 = vpop.permute.xlu0 %67   ;;  %v74_v27 = vpop.permute.xlu1 %73  }
  0x89   :  { %70 = vst.msk [vmem:[#allocation0] sm:$0x1] %vm69_vm11, %v68_v26  }
  0x8a   :  { %76 = vst.msk [vmem:[#allocation0] sm:$0x1] %vm75_vm12, %v74_v27  }
  0x8c   :  { %v80_v28 = vpop.permute.xlu0 %79   ;;  %v86_v29 = vpop.permute.xlu1 %85  }
  0x8d   :  { %82 = vst.msk [vmem:[#allocation0] sm:$0x1] %vm81_vm13, %v80_v28  }
  0x8e   :  { %88 = vst.msk [vmem:[#allocation0] sm:$0x1] %vm87_vm14, %v86_v29  }
  0x90   :  { %v92_v30 = vpop.permute.xlu0 %91  }
  0x91   :  { %94 = vst.msk [vmem:[#allocation0] sm:$0x1] %vm93_vm15, %v92_v30  }
  0x98   :  { %v98_v31 = vld [vmem:[#allocation0] sm:$0x1] }
  0x99   :  { %100 = vst [vmem:[%s208_s1] sm:$0x1] %v98_v31 }

// kernel: conv_bn_relu.1
= control target key start
LH: loop header
LB: loop body
LE: loop exit
PB: predicated region body
PF: predicated region fallthrough
CT: control target
= control target key end

     0   :  { %v755_v0 = vmov 0.0   ;;  %vm756_vm0 = vmmov 0   ;;  %vm63_vm1 = vcmask 523264   ;;  %s936_s1 = inlined_call_operand.vmem [shape: bf16[3,64,128], index: 1, kind: input, shape index: {}]   ;;  %s937_s0 = inlined_call_operand.vmem [shape: f32[2,18,64], index: 0, kind: input, shape index: {}]   ;;  %s938_s2 = inlined_call_operand.vmem [shape: f32[1,128], index: 2, kind: input, shape index: {}]   ;;  %s939_s3 = inlined_call_operand.vmem [shape: bf16[2,16,128], index: 3, kind: output, shape index: {}]  }
   0x1   :  { %657 = vmatprep.subr.bf16.mxu0 %v755_v0  ;;  %669 = vmatprep.subr.bf16.mxu1 %v755_v0  ;;  %v731_v1 = vld [vmem:[%s936_s1 + $0x20] sm:$0xff]   ;;  %v733_v3 = vld [vmem:[%s936_s1 + $0x28] sm:$0xff]   ;;  %v735_v5 = vld [vmem:[%s936_s1 + $0x30] sm:$0xff]  }
   0x2   :  { %v732_v2 = vld [vmem:[%s936_s1] sm:$0xff]   ;;  %665 = vmatprep.mubr.msk.bf16.mxu0 %vm756_vm0, %v755_v0  ;;  %677 = vmatprep.mubr.msk.bf16.mxu1 %vm756_vm0, %v755_v0  ;;  %v734_v4 = vld [vmem:[%s936_s1 + $0x8] sm:$0xff]   ;;  %v736_v6 = vld [vmem:[%s936_s1 + $0x10] sm:$0xff]  }
   0x3   :  { %658 = vmatpush3.bf16.msra.mxu0 %v731_v1  ;;  %670 = vmatpush3.bf16.msra.mxu1 %v732_v2  ;;  %v737_v7 = vld [vmem:[%s936_s1 + $0x38] sm:$0xff]   ;;  %v27_v8 = vld [vmem:[%s937_s0 + $0x1] sm:$0xff]  ;;  %v28_v10 = vld [vmem:[%s937_s0 + $0x9] sm:$0xff] }
   0x4   :  { %659 = vmatprep.subr.bf16.mxu0 %v755_v0  ;;  %671 = vmatprep.subr.bf16.mxu1 %v755_v0  ;;  %v738_v9 = vld [vmem:[%s936_s1 + $0x18] sm:$0xff]   ;;  %v16_v11 = vld [vmem:[%s937_s0] sm:$0xff]  ;;  %v17_v12 = vld [vmem:[%s937_s0 + $0x8] sm:$0xff]  ;;  %v29_v13 = vpack.c.bf16 %v28_v10, %v27_v8 }
   0x5   :  { %v18_v14 = vpack.c.bf16 %v17_v12, %v16_v11  ;;  %v739_v15 = vld [vmem:[%s936_s1 + $0x40] sm:$0xff]   ;;  %v741_v17 = vld [vmem:[%s936_s1 + $0x48] sm:$0xff]   ;;  %v743_v19 = vld [vmem:[%s936_s1 + $0x50] sm:$0xff]  }
   0x6   :  { %v740_v16 = vld [vmem:[%s936_s1 + $0x20] sm:$0xff]   ;;  %v742_v18 = vld [vmem:[%s936_s1 + $0x28] sm:$0xff]   ;;  %v744_v20 = vld [vmem:[%s936_s1 + $0x30] sm:$0xff]  }
   0x7   :  { %660 = vmatpush3.bf16.msra.mxu0 %v733_v3  ;;  %672 = vmatpush3.bf16.msra.mxu1 %v734_v4  ;;  %v745_v21 = vld [vmem:[%s936_s1 + $0x58] sm:$0xff]   ;;  %v176_v22 = vld [vmem:[%s937_s0 + $0x2] sm:$0xff]  ;;  %v177_v23 = vld [vmem:[%s937_s0 + $0xa] sm:$0xff] }
   0x8   :  { %661 = vmatprep.subr.bf16.mxu0 %v755_v0  ;;  %673 = vmatprep.subr.bf16.mxu1 %v755_v0  ;;  %v746_v24 = vld [vmem:[%s936_s1 + $0x38] sm:$0xff]   ;;  %v574_v26 = vld [vmem:[%s937_s0 + $0x21] sm:$0xff]  ;;  %v178_v27 = vpack.c.bf16 %v177_v23, %v176_v22  ;;  %v751_v33 = vld [vmem:[%s936_s1 + $0x10] sm:$0xff]  }
   0x9   :  { %v573_v25 = vld [vmem:[%s937_s0 + $0x19] sm:$0xff]  ;;  %v749_v31 = vld [vmem:[%s936_s1 + $0x8] sm:$0xff]   ;;  %v752_v34 = vld [vmem:[%s936_s1 + $0x50] sm:$0xff]  }
   0xa   :  { %v292_v28 = vpack.c.bf16 %v574_v26, %v573_v25  ;;  %v747_v29 = vld [vmem:[%s936_s1] sm:$0xff]   ;;  %v750_v32 = vld [vmem:[%s936_s1 + $0x48] sm:$0xff]   ;;  %v753_v35 = vld [vmem:[%s936_s1 + $0x18] sm:$0xff]  }
   0xb   :  { %662 = vmatpush3.bf16.msra.mxu0 %v735_v5  ;;  %674 = vmatpush3.bf16.msra.mxu1 %v736_v6  ;;  %v748_v30 = vld [vmem:[%s936_s1 + $0x40] sm:$0xff]   ;;  %v571_v36 = vld [vmem:[%s937_s0 + $0x18] sm:$0xff] }
   0xc   :  { %663 = vmatprep.subr.bf16.mxu0 %v755_v0  ;;  %675 = vmatprep.subr.bf16.mxu1 %v755_v0  ;;  %v572_v37 = vld [vmem:[%s937_s0 + $0x20] sm:$0xff]  ;;  %v754_v38 = vld [vmem:[%s936_s1 + $0x58] sm:$0xff]  }
   0xd   :  { %v593_v39 = vld [vmem:[%s937_s0 + $0x1a] sm:$0xff]  ;;  %v594_v40 = vld [vmem:[%s937_s0 + $0x22] sm:$0xff]  ;;  %v281_v41 = vpack.c.bf16 %v572_v37, %v571_v36 }
   0xe   :  { %v439_v42 = vpack.c.bf16 %v594_v40, %v593_v39  ;;  %v568_v53 = vld [vmem:[%s938_s2] ss:$0 sm:$0xff] }
   0xf   :  { %664 = vmatpush3.bf16.msra.mxu0 %v737_v7  ;;  %676 = vmatpush3.bf16.msra.mxu1 %v738_v9 }
  0x10   :  { %681 = vmatprep.subr.bf16.mxu0 %v755_v0  ;;  %693 = vmatprep.subr.bf16.mxu1 %v755_v0 }
  0x12   :  { %666 = vmatmul.mubr.msk.bf16.vlgmr.msra.gmra.mrb[0].mxu0 %vm63_vm1, %v29_v13  ;;  %678 = vmatmul.mubr.msk.bf16.vlgmr.msra.gmra.mrb[0].mxu1 %vm63_vm1, %v18_v14 }
  0x13   :  { %682 = vmatpush3.bf16.msra.mxu0 %v739_v15  ;;  %694 = vmatpush3.bf16.msra.mxu1 %v740_v16 }
  0x14   :  { %683 = vmatprep.subr.bf16.mxu0 %v755_v0  ;;  %695 = vmatprep.subr.bf16.mxu1 %v755_v0 }
  0x15   :  { %689 = vmatprep.mubr.msk.bf16.mxu0 %vm756_vm0, %v755_v0  ;;  %701 = vmatprep.mubr.msk.bf16.mxu1 %vm756_vm0, %v755_v0 }
  0x17   :  { %684 = vmatpush3.bf16.msra.mxu0 %v741_v17  ;;  %696 = vmatpush3.bf16.msra.mxu1 %v742_v18 }
  0x18   :  { %685 = vmatprep.subr.bf16.mxu0 %v755_v0  ;;  %697 = vmatprep.subr.bf16.mxu1 %v755_v0 }
  0x1b   :  { %686 = vmatpush3.bf16.msra.mxu0 %v743_v19  ;;  %698 = vmatpush3.bf16.msra.mxu1 %v744_v20 }
  0x1c   :  { %687 = vmatprep.subr.bf16.mxu0 %v755_v0  ;;  %699 = vmatprep.subr.bf16.mxu1 %v755_v0 }
  0x1f   :  { %688 = vmatpush3.bf16.msra.mxu0 %v745_v21  ;;  %700 = vmatpush3.bf16.msra.mxu1 %v746_v24 }
  0x20   :  { %705 = vmatprep.subr.bf16.mxu0 %v755_v0  ;;  %717 = vmatprep.subr.bf16.mxu1 %v755_v0 }
  0x22   :  { %690 = vmatmul.mubr.msk.bf16.vlgmr.msra.gmra.mrb[4].mxu0 %vm63_vm1, %v178_v27  ;;  %702 = vmatmul.mubr.msk.bf16.vlgmr.msra.gmra.mrb[4].mxu1 %vm63_vm1, %v292_v28 }
  0x23   :  { %706 = vmatpush3.bf16.msra.mxu0 %v747_v29  ;;  %718 = vmatpush3.bf16.msra.mxu1 %v748_v30 }
  0x24   :  { %707 = vmatprep.subr.bf16.mxu0 %v755_v0  ;;  %719 = vmatprep.subr.bf16.mxu1 %v755_v0 }
  0x25   :  { %713 = vmatprep.mubr.msk.bf16.mxu0 %vm756_vm0, %v755_v0  ;;  %725 = vmatprep.mubr.msk.bf16.mxu1 %vm756_vm0, %v755_v0 }
  0x27   :  { %708 = vmatpush3.bf16.msra.mxu0 %v749_v31  ;;  %720 = vmatpush3.bf16.msra.mxu1 %v750_v32 }
  0x28   :  { %709 = vmatprep.subr.bf16.mxu0 %v755_v0  ;;  %721 = vmatprep.subr.bf16.mxu1 %v755_v0 }
  0x2b   :  { %710 = vmatpush3.bf16.msra.mxu0 %v751_v33  ;;  %722 = vmatpush3.bf16.msra.mxu1 %v752_v34 }
  0x2c   :  { %711 = vmatprep.subr.bf16.mxu0 %v755_v0  ;;  %723 = vmatprep.subr.bf16.mxu1 %v755_v0 }
  0x2f   :  { %712 = vmatpush3.bf16.msra.mxu0 %v753_v35  ;;  %724 = vmatpush3.bf16.msra.mxu1 %v754_v38 }
  0x32   :  { %714 = vmatmul.mubr.msk.bf16.vlgmr.msra.gmra.mrb[8].mxu0 %vm63_vm1, %v281_v41  ;;  %726 = vmatmul.mubr.msk.bf16.vlgmr.msra.gmra.mrb[8].mxu1 %vm63_vm1, %v439_v42 }
  0xe5   :  { %v101_v43 = vpop.f32.mrb[0].mxu0  ;;  %v169_v44 = vpop.f32.mrb[0].mxu1 }
  0xe6   :  { %v667_v45 = vpop.f32.mrb[1].mxu0  ;;  %v170_v46 = vadd.f32 %v169_v44, %v101_v43  ;;  %v679_v47 = vpop.f32.mrb[1].mxu1 }
  0xe7   :  { %v104_v48 = vpop.f32.mrb[2].mxu0  ;;  %v172_v49 = vpop.f32.mrb[2].mxu1 }
  0xe8   :  { %v668_v50 = vpop.f32.mrb[3].mxu0  ;;  %v173_v51 = vadd.f32 %v172_v49, %v104_v48  ;;  %v680_v52 = vpop.f32.mrb[3].mxu1 }
  0xf5   :  { %v249_v54 = vpop.f32.mrb[4].mxu0  ;;  %v362_v56 = vpop.f32.mrb[4].mxu1 }
  0xf6   :  { %v256_v55 = vadd.f32 %v249_v54, %v170_v46  ;;  %v691_v57 = vpop.f32.mrb[5].mxu0  ;;  %v703_v58 = vpop.f32.mrb[5].mxu1 }
  0xf7   :  { %v252_v59 = vpop.f32.mrb[6].mxu0  ;;  %v365_v62 = vpop.f32.mrb[6].mxu1 }
  0xf8   :  { %v264_v60 = vadd.f32 %v568_v53, %v256_v55  ;;  %v257_v61 = vadd.f32 %v252_v59, %v173_v51  ;;  %v692_v63 = vpop.f32.mrb[7].mxu0  ;;  %v704_v0 = vpop.f32.mrb[7].mxu1 }
  0xfa   :  { %v265_v1 = vadd.f32 %v568_v53, %v257_v61  ;;  %v266_v2 = vmax.f32 %v264_v60, 0.0 }
  0xfc   :  { %v267_v3 = vmax.f32 %v265_v1, 0.0 }
  0xfe   :  { %v619_v4 = vpack.c.bf16 %v267_v3, %v266_v2 }
 0x100   :  { %620 = vst [vmem:[%s939_s3] sm:$0xff] %v619_v4  }
 0x105   :  { %v430_v5 = vpop.f32.mrb[8].mxu0  ;;  %v509_v7 = vpop.f32.mrb[8].mxu1 }
 0x106   :  { %v431_v6 = vadd.f32 %v430_v5, %v362_v56  ;;  %v715_v8 = vpop.f32.mrb[9].mxu0  ;;  %v727_v9 = vpop.f32.mrb[9].mxu1 }
 0x107   :  { %v433_v10 = vpop.f32.mrb[10].mxu0  ;;  %v512_v13 = vpop.f32.mrb[10].mxu1 }
 0x108   :  { %v516_v11 = vadd.f32 %v509_v7, %v431_v6  ;;  %v434_v12 = vadd.f32 %v433_v10, %v365_v62  ;;  %v716_v14 = vpop.f32.mrb[11].mxu0  ;;  %v728_v15 = vpop.f32.mrb[11].mxu1 }
 0x10a   :  { %v518_v16 = vadd.f32 %v568_v53, %v516_v11  ;;  %v517_v17 = vadd.f32 %v512_v13, %v434_v12 }
 0x10c   :  { %v519_v18 = vadd.f32 %v568_v53, %v517_v17  ;;  %v520_v19 = vmax.f32 %v518_v16, 0.0 }
 0x10e   :  { %v521_v20 = vmax.f32 %v519_v18, 0.0 }
 0x110   :  { %v624_v21 = vpack.c.bf16 %v521_v20, %v520_v19 }
 0x112   :  { %626 = vst [vmem:[%s939_s3 + $0x8] sm:$0xff] %v624_v21  }

</bundles_post_ra>
